<compile_context>
chip_gen: v6e
topology: v6e:2x2x1
jax: 0.10.0
libtpu: 0.0.40
codegen_flags: <defaults>
</compile_context>

<pallas_src>
import functools

import jax
import jax.numpy as jnp
from jax.experimental import pallas as pl
from jax.experimental.pallas import tpu as pltpu

LANE = 128


def _round_up(n, m):
    return ((n + m - 1) // m) * m


def _dqn_kernel(x_ref, w1_ref, w2_ref, w3_ref, b_ref, o_ref):
    # x_ref : (BM, DIN_P)  bf16      w1_ref: (DIN_P, H_P) bf16
    # w2_ref: (H_P, H_P)   bf16      w3_ref: (H_P, DOUT_P) bf16
    # b_ref : (8, B_LANE)  f32 (rows 0/1/2 = b1/b2/b3, zero padded)
    # o_ref : (BM, DOUT_P) f32
    h_p = w1_ref.shape[1]
    d_out_p = w3_ref.shape[1]

    x = x_ref[...]  # bf16, no extra cast

    # Layer 1: bf16 matmul, f32 accumulate; bias + ReLU in f32.
    h1 = jnp.dot(x, w1_ref[...], preferred_element_type=jnp.float32)
    h1 = jnp.maximum(h1 + b_ref[0:1, :h_p], 0.0).astype(jnp.bfloat16)

    # Layer 2.
    h2 = jnp.dot(h1, w2_ref[...], preferred_element_type=jnp.float32)
    h2 = jnp.maximum(h2 + b_ref[1:2, :h_p], 0.0).astype(jnp.bfloat16)

    # Layer 3 (no activation). Lane-dense f32 store.
    out = jnp.dot(h2, w3_ref[...], preferred_element_type=jnp.float32)
    out = out + b_ref[2:3, :d_out_p]
    o_ref[...] = out.astype(o_ref.dtype)


def pack_dqn_params(params):
    """Pad weights to 128-lane multiples, cast to bf16, pack biases into one
    (8, 128) f32 array. Do this ONCE and reuse across forward calls."""
    w1, b1, w2, b2, w3, b3 = params
    d_in, hidden = w1.shape
    d_out = w3.shape[1]
    d_in_p = _round_up(d_in, LANE)
    h_p = _round_up(hidden, LANE)
    d_out_p = _round_up(d_out, LANE)

    w1p = jnp.zeros((d_in_p, h_p), jnp.bfloat16).at[:d_in, :hidden].set(
        w1.astype(jnp.bfloat16))
    w2p = jnp.zeros((h_p, h_p), jnp.bfloat16).at[:hidden, :hidden].set(
        w2.astype(jnp.bfloat16))
    w3p = jnp.zeros((h_p, d_out_p), jnp.bfloat16).at[:hidden, :d_out].set(
        w3.astype(jnp.bfloat16))

    b_lane = max(h_p, d_out_p)
    ball = jnp.zeros((8, b_lane), jnp.float32)           # (8,128): tile-aligned
    ball = ball.at[0, :hidden].set(b1.reshape(-1).astype(jnp.float32))
    ball = ball.at[1, :hidden].set(b2.reshape(-1).astype(jnp.float32))
    ball = ball.at[2, :d_out].set(b3.reshape(-1).astype(jnp.float32))
    return (w1p, w2p, w3p, ball), d_out


def dqn_forward(x, w1p, w2p, w3p, ball, *, d_out, block_m=512):
    """x: (B, ...) -> flattened to (B, d_in). Returns (B, d_out) float32."""
    B = x.shape[0]
    x2d = x.reshape(B, -1)                               # nn.Flatten
    d_in = x2d.shape[1]
    d_in_p, h_p = w1p.shape
    d_out_p = w3p.shape[1]
    b_lane = ball.shape[1]

    # Batch tile: multiple of 8 sublanes, capped at block_m rows per grid step
    # (keeps 2*x_tile + weights + out_tile far under v7x's 64 MiB VMEM).
    bm = _round_up(min(block_m, _round_up(B, 8)), 8)
    n_tiles = -(-B // bm)
    b_pad = n_tiles * bm

    # Zero-pad batch + input features, cast to bf16 for the MXU.
    xp = jnp.zeros((b_pad, d_in_p), jnp.bfloat16).at[:B, :d_in].set(
        x2d.astype(jnp.bfloat16))

    out_p = pl.pallas_call(
        _dqn_kernel,
        out_shape=jax.ShapeDtypeStruct((b_pad, d_out_p), jnp.float32),
        grid=(n_tiles,),
        in_specs=[
            pl.BlockSpec((bm, d_in_p), lambda i: (i, 0)),      # x: tiled over batch
            pl.BlockSpec((d_in_p, h_p), lambda i: (0, 0)),     # weights: constant
            pl.BlockSpec((h_p, h_p), lambda i: (0, 0)),        #   block index ->
            pl.BlockSpec((h_p, d_out_p), lambda i: (0, 0)),    #   DMA'd once,
            pl.BlockSpec((8, b_lane), lambda i: (0, 0)),       #   VMEM-resident
        ],
        out_specs=pl.BlockSpec((bm, d_out_p), lambda i: (i, 0)),
        compiler_params=pltpu.CompilerParams(
            dimension_semantics=("parallel",)),                # shard batch across TCs
    )(xp, w1p, w2p, w3p, ball)

    return out_p[:B, :d_out]


def init_dqn_params(key, input_dim, output_dim, hidden=24):
    """Deterministic init mimicking torch.nn.Linear default (+/- 1/sqrt(fan_in))."""
    ks = jax.random.split(key, 6)

    def linear(kw, kb, fan_in, fan_out):
        bound = 1.0 / jnp.sqrt(fan_in)
        w = jax.random.uniform(kw, (fan_in, fan_out), jnp.float32, -bound, bound)
        b = jax.random.uniform(kb, (1, fan_out), jnp.float32, -bound, bound)
        return w, b

    w1, b1 = linear(ks[0], ks[1], input_dim, hidden)
    w2, b2 = linear(ks[2], ks[3], hidden, hidden)
    w3, b3 = linear(ks[4], ks[5], hidden, output_dim)
    return (w1, b1, w2, b2, w3, b3)


def _reference(x, params):
    w1, b1, w2, b2, w3, b3 = params
    xf = x.reshape(x.shape[0], -1)
    h = jnp.maximum(xf @ w1 + b1, 0.0)
    h = jnp.maximum(h @ w2 + b2, 0.0)
    return h @ w3 + b3


if __name__ == "__main__":
    key = jax.random.PRNGKey(0)
    k_x, k_x2, k_p = jax.random.split(key, 3)

    # Small example consistent with the module: state (4,4) -> input_dim=16, 4 actions.
    input_dim, output_dim = 16, 4
    params = init_dqn_params(k_p, input_dim, output_dim)
    packed, d_out = pack_dqn_params(params)     # pad/cast weights ONCE

    fwd = jax.jit(functools.partial(dqn_forward, d_out=d_out))

    # Case 1: tiny batch (B=2) — single grid step, padded to 8 rows internally.
    B1 = 2
    x1 = jax.random.normal(k_x, (B1, 4, 4), dtype=jnp.float32)
    out1 = jax.block_until_ready(fwd(x1, *packed))
    ref1 = _reference(x1, params)
    assert out1.shape == (B1, output_dim)
    assert jnp.allclose(out1, ref1, atol=2e-2, rtol=2e-2), "mismatch (B=2)"

    # Case 2: larger batch (B=300) — exercises the batch grid + padding path.
    B2 = 300
    x2 = jax.random.normal(k_x2, (B2, 4, 4), dtype=jnp.float32)
    out2 = jax.block_until_ready(fwd(x2, *packed))
    ref2 = _reference(x2, params)
    assert out2.shape == (B2, output_dim)
    assert jnp.allclose(out2, ref2, atol=2e-2, rtol=2e-2), "mismatch (B=300)"

    print("KERNEL_OK")
</pallas_src>

<mosaic_0001>
module attributes {stable_mosaic.version = 11 : i64} {
  func.func @_dqn_kernel(%arg0: i32, %arg1: memref<8x128xbf16, #tpu.memory_space<vmem>>, %arg2: memref<128x128xbf16, #tpu.memory_space<vmem>>, %arg3: memref<128x128xbf16, #tpu.memory_space<vmem>>, %arg4: memref<128x128xbf16, #tpu.memory_space<vmem>>, %arg5: memref<8x128xf32, #tpu.memory_space<vmem>>, %arg6: memref<8x128xf32, #tpu.memory_space<vmem>>) attributes {dimension_semantics = [#tpu.dimension_semantics<parallel>], iteration_bounds = array<i64: 1>, scalar_prefetch = 0 : i64, scratch_operands = 0 : i64, tpu.core_type = #tpu.core_type<tc>, window_params = [{transform_indices = @transform_0, window_bounds = array<i64: 8, 128>}, {pipeline_mode = #tpu.pipeline_mode<synchronous>, transform_indices = @transform_1, window_bounds = array<i64: 128, 128>}, {pipeline_mode = #tpu.pipeline_mode<synchronous>, transform_indices = @transform_2, window_bounds = array<i64: 128, 128>}, {pipeline_mode = #tpu.pipeline_mode<synchronous>, transform_indices = @transform_3, window_bounds = array<i64: 128, 128>}, {pipeline_mode = #tpu.pipeline_mode<synchronous>, transform_indices = @transform_4, window_bounds = array<i64: 8, 128>}, {transform_indices = @transform_5, window_bounds = array<i64: 8, 128>}]} {
    %c0 = arith.constant 0 : index
    %c0_0 = arith.constant 0 : index
    %0 = vector.load %arg1[%c0, %c0_0] : memref<8x128xbf16, #tpu.memory_space<vmem>>, vector<8x128xbf16>
    %c0_1 = arith.constant 0 : index
    %c0_2 = arith.constant 0 : index
    %1 = vector.load %arg2[%c0_1, %c0_2] : memref<128x128xbf16, #tpu.memory_space<vmem>>, vector<128x128xbf16>
    %cst = arith.constant dense<0.000000e+00> : vector<8x128xf32>
    %2 = tpu.matmul %0, %1, %cst {dimension_numbers = #tpu.dot_dimension_numbers<[1], [0], [0], [1], [0, 0, 1, 1], [], []>} : vector<8x128xbf16>, vector<128x128xbf16>, vector<8x128xf32> -> vector<8x128xf32>
    %c0_3 = arith.constant 0 : index
    %c0_4 = arith.constant 0 : index
    %3 = vector.load %arg5[%c0_3, %c0_4] : memref<8x128xf32, #tpu.memory_space<vmem>>, vector<1x128xf32>
    %4 = vector.broadcast %3 : vector<1x128xf32> to vector<8x128xf32>
    %5 = arith.addf %2, %4 : vector<8x128xf32>
    %cst_5 = arith.constant 0.000000e+00 : f32
    %6 = vector.broadcast %cst_5 : f32 to vector<8x128xf32>
    %7 = arith.maximumf %5, %6 : vector<8x128xf32>
    %8 = arith.truncf %7 : vector<8x128xf32> to vector<8x128xbf16>
    %c0_6 = arith.constant 0 : index
    %c0_7 = arith.constant 0 : index
    %9 = vector.load %arg3[%c0_6, %c0_7] : memref<128x128xbf16, #tpu.memory_space<vmem>>, vector<128x128xbf16>
    %cst_8 = arith.constant dense<0.000000e+00> : vector<8x128xf32>
    %10 = tpu.matmul %8, %9, %cst_8 {dimension_numbers = #tpu.dot_dimension_numbers<[1], [0], [0], [1], [0, 0, 1, 1], [], []>} : vector<8x128xbf16>, vector<128x128xbf16>, vector<8x128xf32> -> vector<8x128xf32>
    %c1 = arith.constant 1 : index
    %c0_9 = arith.constant 0 : index
    %11 = vector.load %arg5[%c1, %c0_9] : memref<8x128xf32, #tpu.memory_space<vmem>>, vector<1x128xf32>
    %12 = vector.broadcast %11 : vector<1x128xf32> to vector<8x128xf32>
    %13 = arith.addf %10, %12 : vector<8x128xf32>
    %cst_10 = arith.constant 0.000000e+00 : f32
    %14 = vector.broadcast %cst_10 : f32 to vector<8x128xf32>
    %15 = arith.maximumf %13, %14 : vector<8x128xf32>
    %16 = arith.truncf %15 : vector<8x128xf32> to vector<8x128xbf16>
    %c0_11 = arith.constant 0 : index
    %c0_12 = arith.constant 0 : index
    %17 = vector.load %arg4[%c0_11, %c0_12] : memref<128x128xbf16, #tpu.memory_space<vmem>>, vector<128x128xbf16>
    %cst_13 = arith.constant dense<0.000000e+00> : vector<8x128xf32>
    %18 = tpu.matmul %16, %17, %cst_13 {dimension_numbers = #tpu.dot_dimension_numbers<[1], [0], [0], [1], [0, 0, 1, 1], [], []>} : vector<8x128xbf16>, vector<128x128xbf16>, vector<8x128xf32> -> vector<8x128xf32>
    %c2 = arith.constant 2 : index
    %c0_14 = arith.constant 0 : index
    %19 = vector.load %arg5[%c2, %c0_14] : memref<8x128xf32, #tpu.memory_space<vmem>>, vector<1x128xf32>
    %20 = vector.broadcast %19 : vector<1x128xf32> to vector<8x128xf32>
    %21 = arith.addf %18, %20 : vector<8x128xf32>
    %c0_15 = arith.constant 0 : index
    %c0_16 = arith.constant 0 : index
    %22 = vector.load %arg6[%c0_15, %c0_16] : memref<8x128xf32, #tpu.memory_space<vmem>>, vector<8x128xf32>
    tpu.vector_store %arg6[%c0_15, %c0_16], %21 {strides = array<i32>} : memref<8x128xf32, #tpu.memory_space<vmem>>, vector<8x128xf32>,
    return
  }
  func.func @transform_0(%arg0: i32) -> (i32, i32) {
    %c0_i32 = arith.constant 0 : i32
    %c0_i32_0 = arith.constant 0 : i32
    return %arg0, %c0_i32 : i32, i32
  }
  func.func @transform_1(%arg0: i32) -> (i32, i32) {
    %c0_i32 = arith.constant 0 : i32
    %c0_i32_0 = arith.constant 0 : i32
    %c0_i32_1 = arith.constant 0 : i32
    return %c0_i32, %c0_i32_0 : i32, i32
  }
  func.func @transform_2(%arg0: i32) -> (i32, i32) {
    %c0_i32 = arith.constant 0 : i32
    %c0_i32_0 = arith.constant 0 : i32
    %c0_i32_1 = arith.constant 0 : i32
    return %c0_i32, %c0_i32_0 : i32, i32
  }
  func.func @transform_3(%arg0: i32) -> (i32, i32) {
    %c0_i32 = arith.constant 0 : i32
    %c0_i32_0 = arith.constant 0 : i32
    %c0_i32_1 = arith.constant 0 : i32
    return %c0_i32, %c0_i32_0 : i32, i32
  }
  func.func @transform_4(%arg0: i32) -> (i32, i32) {
    %c0_i32 = arith.constant 0 : i32
    %c0_i32_0 = arith.constant 0 : i32
    %c0_i32_1 = arith.constant 0 : i32
    return %c0_i32, %c0_i32_0 : i32, i32
  }
  func.func @transform_5(%arg0: i32) -> (i32, i32) {
    %c0_i32 = arith.constant 0 : i32
    %c0_i32_0 = arith.constant 0 : i32
    return %arg0, %c0_i32 : i32, i32
  }
}

</mosaic_0001>

<bundles_post_ra>
// kernel: dqn_forward.1
= control target key start
LH: loop header
LB: loop body
LE: loop exit
PB: predicated region body
PF: predicated region fallthrough
CT: control target
= control target key end

     0   :  { %10 = vsyncpa [#allocation3], 0  ;;  %s701_s0 = inlined_call_operand.vmem [shape: bf16[8,128], index: 0, kind: input, shape index: {}]   ;;  %s702_s1 = inlined_call_operand.hbm [shape: bf16[128,128], index: 1, kind: input, shape index: {}]   ;;  %s703_s2 = inlined_call_operand.hbm [shape: bf16[128,128], index: 2, kind: input, shape index: {}]   ;;  %s704_s3 = inlined_call_operand.hbm [shape: bf16[128,128], index: 3, kind: input, shape index: {}]   ;;  %s705_s4 = inlined_call_operand.vmem [shape: f32[8,128], index: 4, kind: input, shape index: {}]   ;;  %s706_s5 = inlined_call_operand.vmem [shape: f32[8,128], index: 5, kind: output, shape index: {}]  }
   0x1   :  { %11 = vsyncpa [#allocation5], 0  ;;  %s610_s18 = smov [#allocation4]   ;;  %s611_s20 = smov [#allocation2]  }
   0x2   :  { %s31_s19 = sshll.u32 %s610_s18, 4  ;;  %s19_s21 = sshll.u32 %s611_s20, 4  ;;  %s32_s19 = int_to_ptr.vmem [resolvable:$true] %s31_s19  ;;  %s20_s21 = int_to_ptr.vmem [resolvable:$true] %s19_s21 }
   0x3   :  { %s554_s22 = scalar_lea.vmem %s32_s19, 1024  ;;  %p559_p1 = scmp.lt.s32.totalorder %s32_s19, %s32_s19 }
   0x4   :  { %p555_p0 = scmp.ne.s32.totalorder %s32_s19, %s554_s22  ;;  %p560_p2 = scmp.lt.s32.totalorder %s554_s22, %s554_s22 }
   0x6   :  { %p561_p3 = por %p560_p2, %p559_p1 }
   0x8   :  { %p562_p4 = pnand %p561_p3, %p555_p0 }
   0xa   :  { %565 = shalt.err (!%p562_p4)
}
   0xb   :  { %s612_s23 = smov 64   ;;  %s613_s24 = smov 4  }
   0xc   :  { %37 = dma.hbm_to_vmem [thread:$0]  %s703_s2, 1024, %s32_s19, [#allocation5], %s612_s23, %s612_s23, %s613_s24  }
   0xd   :  { %s574_s27 = scalar_lea.vmem %s20_s21, 1024  ;;  %p579_p6 = scmp.lt.s32.totalorder %s20_s21, %s20_s21 }
   0xe   :  { %p575_p5 = scmp.ne.s32.totalorder %s20_s21, %s574_s27  ;;  %p580_p7 = scmp.lt.s32.totalorder %s574_s27, %s574_s27 }
  0x10   :  { %p581_p8 = por %p580_p7, %p579_p6 }
  0x12   :  { %p582_p9 = pnand %p581_p8, %p575_p5 }
  0x14   :  { %585 = shalt.err (!%p582_p9)
}
  0x15   :  { %25 = dma.hbm_to_vmem [thread:$0]  %s702_s1, 1024, %s20_s21, [#allocation3], %s612_s23, %s612_s23, %s613_s24  }
  0x16   :  { %s614_s30 = smov [#allocation6]  }
  0x17   :  { %s43_s6 = sshll.u32 %s614_s30, 4  ;;  %s44_s6 = int_to_ptr.vmem [resolvable:$true] %s43_s6 }
  0x18   :  { %s594_s7 = scalar_lea.vmem %s44_s6, 1024  ;;  %p599_p11 = scmp.lt.s32.totalorder %s44_s6, %s44_s6 }
  0x19   :  { %p595_p10 = scmp.ne.s32.totalorder %s44_s6, %s594_s7  ;;  %p600_p12 = scmp.lt.s32.totalorder %s594_s7, %s594_s7 }
  0x1b   :  { %p601_p13 = por %p600_p12, %p599_p11 }
  0x1d   :  { %p602_p0 = pnand %p601_p13, %p595_p10 }
  0x1f   :  { %605 = shalt.err (!%p602_p0)
}
  0x20   :  { %49 = dma.hbm_to_vmem [thread:$0]  %s704_s3, 1024, %s44_s6, [#allocation5], %s612_s23, %s612_s23, %s613_s24  }
  0x21   :  { %606 = dma.done.wait [#allocation3], 1024  }
  0x22   :  { %607 = vsyncadd [#allocation3], 4294966272 }
  0x23   :  { %608 = dma.done.wait [#allocation5], 2048  }
  0x24   :  { %609 = vsyncadd [#allocation5], 4294965248  ;;  %v615_v0 = vmov 0.0   ;;  %vm616_vm0 = vmmov 0   ;;  %v522_v1 = vld [vmem:[#allocation2 + $0x38] sm:$0xff]   ;;  %v523_v2 = vld [vmem:[#allocation2 + $0x30] sm:$0xff]  }
  0x25   :  { %455 = vmatprep.subr.bf16.mxu0 %v615_v0  ;;  %471 = vmatprep.mubr.msk.bf16.mxu0 %vm616_vm0, %v615_v0  ;;  %v524_v3 = vld [vmem:[#allocation2 + $0x28] sm:$0xff]   ;;  %v530_v4 = vld [vmem:[#allocation4 + $0x38] sm:$0xff]   ;;  %v525_v5 = vld [vmem:[#allocation2 + $0x20] sm:$0xff]  }
  0x26   :  { %475 = vmatprep.subr.bf16.mxu1 %v615_v0  ;;  %491 = vmatprep.mubr.msk.bf16.mxu1 %vm616_vm0, %v615_v0  ;;  %v531_v6 = vld [vmem:[#allocation4 + $0x30] sm:$0xff]   ;;  %v526_v7 = vld [vmem:[#allocation2 + $0x18] sm:$0xff]   ;;  %v532_v8 = vld [vmem:[#allocation4 + $0x28] sm:$0xff]  }
  0x27   :  { %456 = vmatpush3.bf16.msra.mxu0 %v522_v1  ;;  %476 = vmatpush3.bf16.msra.mxu1 %v530_v4  ;;  %v527_v9 = vld [vmem:[#allocation2 + $0x10] sm:$0xff]   ;;  %v533_v10 = vld [vmem:[#allocation4 + $0x20] sm:$0xff]   ;;  %v528_v11 = vld [vmem:[#allocation2 + $0x8] sm:$0xff]  }
  0x28   :  { %457 = vmatprep.subr.bf16.mxu0 %v615_v0  ;;  %477 = vmatprep.subr.bf16.mxu1 %v615_v0  ;;  %v534_v12 = vld [vmem:[#allocation4 + $0x18] sm:$0xff]   ;;  %v529_v13 = vld [vmem:[#allocation2] sm:$0xff]   ;;  %v535_v14 = vld [vmem:[#allocation4 + $0x10] sm:$0xff]  }
  0x29   :  { %v62_v15 = vld [vmem:[%s701_s0] sm:$0xf]  ;;  %v536_v16 = vld [vmem:[#allocation4 + $0x8] sm:$0xff]   ;;  %v538_v18 = vld [vmem:[#allocation6 + $0x38] sm:$0xff]  }
  0x2a   :  { %v537_v17 = vld [vmem:[#allocation4] sm:$0xff]   ;;  %v539_v19 = vld [vmem:[#allocation6 + $0x30] sm:$0xff]   ;;  %v540_v20 = vld [vmem:[#allocation6 + $0x28] sm:$0xff]  }
  0x2b   :  { %458 = vmatpush3.bf16.msra.mxu0 %v523_v2  ;;  %478 = vmatpush3.bf16.msra.mxu1 %v531_v6  ;;  %v541_v21 = vld [vmem:[#allocation6 + $0x20] sm:$0xff]   ;;  %v542_v22 = vld [vmem:[#allocation6 + $0x18] sm:$0xff]   ;;  %v543_v23 = vld [vmem:[#allocation6 + $0x10] sm:$0xff]  }
  0x2c   :  { %459 = vmatprep.subr.bf16.mxu0 %v615_v0  ;;  %479 = vmatprep.subr.bf16.mxu1 %v615_v0  ;;  %v401_v24 = vld [vmem:[%s705_s4] ss:$0 sm:$0xff]  ;;  %v544_v32 = vld [vmem:[#allocation6 + $0x8] sm:$0xff]   ;;  %v410_v34 = vld [vmem:[%s705_s4 + $0x1] ss:$0 sm:$0xff] }
  0x2d   :  { %v545_v33 = vld [vmem:[#allocation6] sm:$0xff]  }
  0x2e   :  { %v419_v42 = vld [vmem:[%s705_s4 + $0x2] ss:$0 sm:$0xff] }
  0x2f   :  { %460 = vmatpush3.bf16.msra.mxu0 %v524_v3  ;;  %480 = vmatpush3.bf16.msra.mxu1 %v532_v8 }
  0x30   :  { %461 = vmatprep.subr.bf16.mxu0 %v615_v0  ;;  %481 = vmatprep.subr.bf16.mxu1 %v615_v0 }
  0x33   :  { %462 = vmatpush3.bf16.msra.mxu0 %v525_v5  ;;  %482 = vmatpush3.bf16.msra.mxu1 %v533_v10 }
  0x34   :  { %463 = vmatprep.subr.bf16.mxu0 %v615_v0  ;;  %483 = vmatprep.subr.bf16.mxu1 %v615_v0 }
  0x37   :  { %464 = vmatpush3.bf16.msra.mxu0 %v526_v7  ;;  %484 = vmatpush3.bf16.msra.mxu1 %v534_v12 }
  0x38   :  { %465 = vmatprep.subr.bf16.mxu0 %v615_v0  ;;  %485 = vmatprep.subr.bf16.mxu1 %v615_v0 }
  0x3b   :  { %466 = vmatpush3.bf16.msra.mxu0 %v527_v9  ;;  %486 = vmatpush3.bf16.msra.mxu1 %v535_v14 }
  0x3c   :  { %467 = vmatprep.subr.bf16.mxu0 %v615_v0  ;;  %487 = vmatprep.subr.bf16.mxu1 %v615_v0 }
  0x3f   :  { %468 = vmatpush3.bf16.msra.mxu0 %v528_v11  ;;  %488 = vmatpush3.bf16.msra.mxu1 %v536_v16 }
  0x40   :  { %469 = vmatprep.subr.bf16.mxu0 %v615_v0  ;;  %489 = vmatprep.subr.bf16.mxu1 %v615_v0 }
  0x43   :  { %470 = vmatpush3.bf16.msra.mxu0 %v529_v13  ;;  %490 = vmatpush3.bf16.msra.mxu1 %v537_v17 }
  0x44   :  { %495 = vmatprep.subr.bf16.mxu0 %v615_v0 }
  0x46   :  { %472 = vmatmul.mubr.bf16.vlgmr.msra.gmra.mxu0 %v62_v15 }
  0x47   :  { %511 = vmatprep.mubr.msk.bf16.mxu0 %vm616_vm0, %v615_v0  ;;  %496 = vmatpush3.bf16.msra.mxu0 %v538_v18 }
  0x48   :  { %497 = vmatprep.subr.bf16.mxu0 %v615_v0 }
  0x4b   :  { %498 = vmatpush3.bf16.msra.mxu0 %v539_v19 }
  0x4c   :  { %499 = vmatprep.subr.bf16.mxu0 %v615_v0 }
  0x4f   :  { %500 = vmatpush3.bf16.msra.mxu0 %v540_v20 }
  0x50   :  { %501 = vmatprep.subr.bf16.mxu0 %v615_v0 }
  0x53   :  { %502 = vmatpush3.bf16.msra.mxu0 %v541_v21 }
  0x54   :  { %503 = vmatprep.subr.bf16.mxu0 %v615_v0 }
  0x57   :  { %504 = vmatpush3.bf16.msra.mxu0 %v542_v22 }
  0x58   :  { %505 = vmatprep.subr.bf16.mxu0 %v615_v0 }
  0x5b   :  { %506 = vmatpush3.bf16.msra.mxu0 %v543_v23 }
  0x5c   :  { %507 = vmatprep.subr.bf16.mxu0 %v615_v0 }
  0x5f   :  { %508 = vmatpush3.bf16.msra.mxu0 %v544_v32 }
  0x60   :  { %509 = vmatprep.subr.bf16.mxu0 %v615_v0 }
  0x63   :  { %510 = vmatpush3.bf16.msra.mxu0 %v545_v33 }
 0x106   :  { %v166_v25 = vpop.f32.mrf.mxu0 }
 0x107   :  { %v167_v26 = vadd.f32 %v401_v24, %v166_v25 }
 0x108   :  { %v473_v27 = vpop.f32.mrf.mxu0 }
 0x109   :  { %v172_v28 = vmax.f32 %v167_v26, 0.0 }
 0x10a   :  { %v169_v29 = vpop.f32.mrf.mxu0 }
 0x10b   :  { %v173_v30 = vpack.c.bf16 %v172_v28, %v172_v28 }
 0x10c   :  { %v474_v31 = vpop.f32.mrf.mxu0 }
 0x10d   :  { %492 = vmatmul.mubr.bf16.vlgmr.msra.gmra.mxu1 %v173_v30 }
 0x1cd   :  { %v277_v35 = vpop.f32.mrf.mxu1 }
 0x1ce   :  { %v278_v36 = vadd.f32 %v410_v34, %v277_v35 }
 0x1cf   :  { %v493_v37 = vpop.f32.mrf.mxu1 }
 0x1d0   :  { %v283_v38 = vmax.f32 %v278_v36, 0.0 }
 0x1d1   :  { %v280_v39 = vpop.f32.mrf.mxu1 }
 0x1d2   :  { %v284_v40 = vpack.c.bf16 %v283_v38, %v283_v38 }
 0x1d3   :  { %v494_v41 = vpop.f32.mrf.mxu1 }
 0x1d4   :  { %512 = vmatmul.mubr.bf16.vlgmr.msra.gmra.mxu0 %v284_v40 }
 0x294   :  { %v388_v43 = vpop.f32.mrf.mxu0 }
 0x295   :  { %v389_v44 = vadd.f32 %v419_v42, %v388_v43 }
 0x296   :  { %v513_v45 = vpop.f32.mrf.mxu0 }
 0x297   :  { %394 = vst [vmem:[%s706_s5] sm:$0xff] %v389_v44 }
 0x298   :  { %v391_v46 = vpop.f32.mrf.mxu0 }
 0x29a   :  { %v514_v47 = vpop.f32.mrf.mxu0 }
 0x29b   :  { %399 = vsyncpa [#allocation3], 1 }
 0x29c   :  { %400 = vsyncpa [#allocation5], 1 }

</bundles_post_ra>
